<compile_context>
chip_gen: v5e
topology: v5e:2x2
jax: 0.10.0
libtpu: 0.0.40
codegen_flags: <defaults>
</compile_context>

<pallas_src>
import functools

import jax
import jax.numpy as jnp
from jax.experimental import pallas as pl
from jax.experimental.pallas import tpu as pltpu


def _round_up(x, m):
    return (x + m - 1) // m * m


def _pick_tile_n(num_patches, tile_n):
    # Multiple of 16 (bf16 sublane packing), never larger than padded N.
    return min(tile_n, _round_up(num_patches, 16))


# ----------------------------- Pallas kernel ------------------------------ #
def _patch_embed_kernel(x_ref, w_ref, pos_ref, o_ref):
    # x_ref:   (1, TN, Kp)  bf16 flattened-patch tile
    # w_ref:   (Kp, Dp)     bf16 conv weight (K-major), VMEM-resident (const idx)
    # pos_ref: (TN, Dp)     f32  position embedding + conv bias (pre-folded),
    #                       resident across the inner batch axis
    # o_ref:   (1, TN, Dp)  out_dtype
    y = jnp.dot(x_ref[0], w_ref[...], preferred_element_type=jnp.float32)
    o_ref[0] = (y + pos_ref[...]).astype(o_ref.dtype)


# --------------------------- one-time param prep --------------------------- #
def prepare_siglip_embed_params(conv_weight, conv_bias, pos_emb, *,
                                tile_n=256, compute_dtype=jnp.bfloat16):
    """Hoisted out of the per-step forward:
       - conv weight (D, C, P, P) -> (Kp, Dp), K-major, lane-padded, bf16
       - conv_bias folded into pos_emb, padded to (N_pad, Dp), kept f32
    """
    D, C, P, _ = conv_weight.shape
    K = C * P * P
    Kp = _round_up(K, 128)
    Dp = _round_up(D, 128)
    w = conv_weight.reshape(D, K).T                               # (K, D)
    w = jnp.pad(w, ((0, Kp - K), (0, Dp - D))).astype(compute_dtype)

    N = pos_emb.shape[0]
    TN = _pick_tile_n(N, tile_n)
    N_pad = _round_up(N, TN)
    pos = (pos_emb + conv_bias[None, :]).astype(jnp.float32)      # (N, D)
    pos = jnp.pad(pos, ((0, N_pad - N), (0, Dp - D)))             # (N_pad, Dp)
    return w, pos


# ------------------------------- forward ----------------------------------- #
@functools.partial(
    jax.jit,
    static_argnames=("patch_size", "embed_dim", "tile_n", "compute_dtype",
                     "out_dtype"))
def siglip_vision_embeddings(pixel_values, w_pad, pos_bias_pad, *,
                             patch_size, embed_dim, tile_n=256,
                             compute_dtype=jnp.bfloat16, out_dtype=None):
    """pixel_values: (B, C, H, W); w_pad: (Kp, Dp), pos_bias_pad: (N_pad, Dp)
    from prepare_siglip_embed_params (same tile_n).  Returns
    (B, num_patches, embed_dim) in out_dtype (default: compute_dtype)."""
    if out_dtype is None:
        out_dtype = compute_dtype

    B, C, H, W = pixel_values.shape
    P = patch_size
    Hp, Wp = H // P, W // P
    N = Hp * Wp
    K = C * P * P
    Kp, Dp = w_pad.shape

    TN = _pick_tile_n(N, tile_n)
    N_pad = _round_up(N, TN)
    assert pos_bias_pad.shape[0] == N_pad, (
        "pos_bias_pad was prepared with a different tile_n / num_patches")

    # Patchify (im2col) in the compute dtype: half the HBM round-trip of f32.
    x = pixel_values.astype(compute_dtype).reshape(B, C, Hp, P, Wp, P)
    x = x.transpose(0, 2, 4, 1, 3, 5).reshape(B, N, K)
    x = jnp.pad(x, ((0, 0), (0, N_pad - N), (0, Kp - K)))

    c_item = jnp.dtype(compute_dtype).itemsize
    o_item = jnp.dtype(out_dtype).itemsize
    cost = pl.CostEstimate(
        flops=2 * B * N_pad * Kp * Dp,
        transcendentals=0,
        bytes_accessed=(x.size * c_item + w_pad.size * c_item
                        + pos_bias_pad.size * 4 + B * N_pad * Dp * o_item),
    )

    # Grid: patch tiles outer, batch inner => pos tile & weight stay resident
    # across the (fast) batch axis; both axes are independent ("parallel").
    out = pl.pallas_call(
        _patch_embed_kernel,
        out_shape=jax.ShapeDtypeStruct((B, N_pad, Dp), out_dtype),
        grid_spec=pltpu.PrefetchScalarGridSpec(
            num_scalar_prefetch=0,
            grid=(N_pad // TN, B),
            in_specs=[
                pl.BlockSpec((1, TN, Kp), lambda n, b: (b, n, 0)),
                pl.BlockSpec((Kp, Dp), lambda n, b: (0, 0)),
                pl.BlockSpec((TN, Dp), lambda n, b: (n, 0)),
            ],
            out_specs=pl.BlockSpec((1, TN, Dp), lambda n, b: (b, n, 0)),
        ),
        compiler_params=pltpu.CompilerParams(
            dimension_semantics=("parallel", "parallel")),
        cost_estimate=cost,
    )(x, w_pad, pos_bias_pad)

    # Strip N / D padding (no-op along D when embed_dim % 128 == 0 and along
    # N when N_pad == N).
    return out[:, :N, :embed_dim]


# ---------------------------- reference (JAX) ------------------------------ #
def _reference(pixel_values, conv_weight, conv_bias, pos_emb, patch_size):
    B, C, H, W = pixel_values.shape
    D = conv_weight.shape[0]
    P = patch_size
    conv = jax.lax.conv_general_dilated(
        pixel_values, conv_weight,
        window_strides=(P, P), padding="VALID",
        dimension_numbers=("NCHW", "OIHW", "NCHW"),
    ) + conv_bias.reshape(1, D, 1, 1)                  # (B, D, Hp, Wp)
    emb = conv.reshape(B, D, -1).transpose(0, 2, 1)    # flatten(2).transpose(1,2)
    return emb + pos_emb[None, :, :]


# --------------------------------- main ------------------------------------ #
if __name__ == "__main__":
    # small synthetic config: channels=3, image=16, patch=4 -> 16 patches, D=32
    num_channels, image_size, patch_size, hidden_size = 3, 16, 4, 32
    batch = 2
    num_patches = (image_size // patch_size) ** 2

    key = jax.random.PRNGKey(0)
    k_x, k_w, k_b, k_p = jax.random.split(key, 4)
    pixel_values = jax.random.normal(
        k_x, (batch, num_channels, image_size, image_size), dtype=jnp.float32)
    conv_weight = jax.random.normal(
        k_w, (hidden_size, num_channels, patch_size, patch_size),
        dtype=jnp.float32) * 0.02
    conv_bias = jax.random.normal(k_b, (hidden_size,), dtype=jnp.float32) * 0.02
    pos_emb = jax.random.normal(
        k_p, (num_patches, hidden_size), dtype=jnp.float32) * 0.02

    # One-time weight/pos preparation (hoisted out of the per-call forward).
    tile_n = 256
    w_pad, pos_bias_pad = prepare_siglip_embed_params(
        conv_weight, conv_bias, pos_emb, tile_n=tile_n)

    out = siglip_vision_embeddings(
        pixel_values, w_pad, pos_bias_pad,
        patch_size=patch_size, embed_dim=hidden_size, tile_n=tile_n)
    out = jax.block_until_ready(out)

    ref = _reference(pixel_values, conv_weight, conv_bias, pos_emb, patch_size)
    assert out.shape == (batch, num_patches, hidden_size)
    # Deliberate precision choice: bf16 matmul operands + bf16 output with f32
    # MXU accumulation; compare against the f32 conv reference at a
    # bf16-appropriate tolerance.
    out_f32 = out.astype(jnp.float32)
    max_err = float(jnp.max(jnp.abs(out_f32 - ref)))
    assert jnp.allclose(out_f32, ref, atol=2e-2, rtol=2e-2), max_err
    print("KERNEL_OK")
</pallas_src>

<mosaic_0001>
module attributes {stable_mosaic.version = 11 : i64} {
  func.func @_patch_embed_kernel(%arg0: i32, %arg1: i32, %arg2: memref<1x16x128xbf16, #tpu.memory_space<vmem>>, %arg3: memref<128x128xbf16, #tpu.memory_space<vmem>>, %arg4: memref<16x128xf32, #tpu.memory_space<vmem>>, %arg5: memref<1x16x128xbf16, #tpu.memory_space<vmem>>) attributes {dimension_semantics = [#tpu.dimension_semantics<parallel>, #tpu.dimension_semantics<parallel>], iteration_bounds = array<i64: 1, 2>, scalar_prefetch = 0 : i64, scratch_operands = 0 : i64, tpu.core_type = #tpu.core_type<tc>, window_params = [{transform_indices = @transform_0, window_bounds = array<i64: 1, 16, 128>}, {pipeline_mode = #tpu.pipeline_mode<synchronous>, transform_indices = @transform_1, window_bounds = array<i64: 128, 128>}, {transform_indices = @transform_2, window_bounds = array<i64: 16, 128>}, {transform_indices = @transform_3, window_bounds = array<i64: 1, 16, 128>}]} {
    %c0 = arith.constant 0 : index
    %c0_0 = arith.constant 0 : index
    %c0_1 = arith.constant 0 : index
    %0 = vector.load %arg2[%c0, %c0_0, %c0_1] : memref<1x16x128xbf16, #tpu.memory_space<vmem>>, vector<1x16x128xbf16>
    %1 = vector.shape_cast %0 : vector<1x16x128xbf16> to vector<16x128xbf16>
    %c0_2 = arith.constant 0 : index
    %c0_3 = arith.constant 0 : index
    %2 = vector.load %arg3[%c0_2, %c0_3] : memref<128x128xbf16, #tpu.memory_space<vmem>>, vector<128x128xbf16>
    %cst = arith.constant dense<0.000000e+00> : vector<16x128xf32>
    %3 = tpu.matmul %1, %2, %cst {dimension_numbers = #tpu.dot_dimension_numbers<[1], [0], [0], [1], [0, 0, 1, 1], [], []>} : vector<16x128xbf16>, vector<128x128xbf16>, vector<16x128xf32> -> vector<16x128xf32>
    %c0_4 = arith.constant 0 : index
    %c0_5 = arith.constant 0 : index
    %4 = vector.load %arg4[%c0_4, %c0_5] : memref<16x128xf32, #tpu.memory_space<vmem>>, vector<16x128xf32>
    %5 = arith.addf %3, %4 : vector<16x128xf32>
    %6 = arith.truncf %5 : vector<16x128xf32> to vector<16x128xbf16>
    %c0_6 = arith.constant 0 : index
    %c0_7 = arith.constant 0 : index
    %c0_8 = arith.constant 0 : index
    %7 = vector.load %arg5[%c0_6, %c0_7, %c0_8] : memref<1x16x128xbf16, #tpu.memory_space<vmem>>, vector<1x16x128xbf16>
    %8 = vector.shape_cast %7 : vector<1x16x128xbf16> to vector<16x128xbf16>
    %9 = vector.shape_cast %6 : vector<16x128xbf16> to vector<1x16x128xbf16>
    tpu.vector_store %arg5[%c0_6, %c0_7, %c0_8], %9 {strides = array<i32>} : memref<1x16x128xbf16, #tpu.memory_space<vmem>>, vector<1x16x128xbf16>,
    return
  }
  func.func @transform_0(%arg0: i32, %arg1: i32) -> (i32, i32, i32) {
    %c0_i32 = arith.constant 0 : i32
    %c0_i32_0 = arith.constant 0 : i32
    return %arg1, %arg0, %c0_i32 : i32, i32, i32
  }
  func.func @transform_1(%arg0: i32, %arg1: i32) -> (i32, i32) {
    %c0_i32 = arith.constant 0 : i32
    %c0_i32_0 = arith.constant 0 : i32
    %c0_i32_1 = arith.constant 0 : i32
    return %c0_i32, %c0_i32_0 : i32, i32
  }
  func.func @transform_2(%arg0: i32, %arg1: i32) -> (i32, i32) {
    %c0_i32 = arith.constant 0 : i32
    %c0_i32_0 = arith.constant 0 : i32
    return %arg0, %c0_i32 : i32, i32
  }
  func.func @transform_3(%arg0: i32, %arg1: i32) -> (i32, i32, i32) {
    %c0_i32 = arith.constant 0 : i32
    %c0_i32_0 = arith.constant 0 : i32
    return %arg1, %arg0, %c0_i32 : i32, i32, i32
  }
}

</mosaic_0001>

<bundles_post_ra>
// kernel: siglip_vision_embeddings.1
= control target key start
LH: loop header
LB: loop body
LE: loop exit
PB: predicated region body
PF: predicated region fallthrough
CT: control target
= control target key end

     0   :  { %8 = vsyncpa [#allocation3], 0  ;;  %s781_s0 = inlined_call_operand.vmem [shape: bf16[2,16,128], index: 0, kind: input, shape index: {}]   ;;  %s782_s1 = inlined_call_operand.vmem [shape: bf16[128,128], index: 1, kind: input, shape index: {}]   ;;  %s783_s2 = inlined_call_operand.vmem [shape: f32[16,128], index: 2, kind: input, shape index: {}]   ;;  %s784_s3 = inlined_call_operand.hbm [shape: bf16[2,16,128], index: 3, kind: output, shape index: {}]  }
   0x1   :  { %10 = vsyncpa [#allocation3 + $0x1], 0  ;;  %s651_s12 = smov 0   ;;  %s653_s13 = smov 0  }
   0x2   :  { %s655_s14 = smov 0   ;;  %s657_s15 = smov 0  }
   0x3   :  { %s659_s16 = smov 0   ;;  %s661_s17 = smov 0  }
   0x4 LB: > { %s426_s18 = sadd.s32 4294967295, %s627_s17   ;;  %s427_s19 = sadd.s32 4294967294, %s627_s17   ;;  %s627_s17 = sphi %s661_s17, %s16_s17   ;;  %s623_s16 = sphi %s659_s16, %s791_s16   ;;  %s619_s15 = sphi %s657_s15, %s790_s15   ;;  %s615_s14 = sphi %s655_s14, %s789_s14   ;;  %s611_s13 = sphi %s653_s13, %s788_s13   ;;  %s607_s12 = sphi %s651_s12, %s787_s12  }
   0x5   : > { %s25_s20 = sadd.s32 1, %s623_s16  ;;  %s112_s21 = sadd.s32 1, %s615_s14 }
   0x6   : > { %p26_p0 = scmp.ge.s32.totalorder %s25_s20, 2  ;;  %p122_p1 = scmp.ne.s32.totalorder %s615_s14, %s611_s13 }
   0x7   : > { %p123_p2 = scmp.eq.s32.totalorder %s426_s18, 1  ;;  %p128_p3 = scmp.ne.s32.totalorder %s611_s13, %s607_s12 }
   0x8   : > { %s793_s20 = smov (%p26_p0, %s25_s20), 0  ;;  %p129_p5 = scmp.eq.s32.totalorder %s427_s19, 1 }
   0x9   : > { %p691_p4 = por %p123_p2, %p122_p1  ;;  %s107_s23 = ssub.s32 %s623_s16, %s793_s20 }
   0xa   : > { %p431_p6 = scmp.ge.s32.totalorder %s627_s17, 1  ;;  %p110_p7 = scmp.eq.s32.totalorder %s107_s23, 0 }
   0xb   : > { %p698_p8 = por %p129_p5, %p128_p3  ;;  %p172_p9 = scmp.lt.s32.totalorder %s627_s17, 3 }
   0xc   : > { %s704_s25 = scalar_select %p110_p7, %s615_s14, %s112_s21  }
   0xd   : > { %p173_p10 = pnand %p431_p6, %p172_p9 }
   0xe   : > { %p206_p11 = scmp.lt.s32.totalorder (!%p173_p10), %s619_s15, 1  ;;  %s202_s30 = sand.u32 (!%p173_p10), 1, %s611_s13  }
   0xf   : > { %176 = sbr.rel (%p173_p10) target bundleno = 194 (0xc2), region = 32  ;;  %s432_s4 = sshll.u32 (!%p173_p10), %s202_s30, 3 }
  0x10   : > { %s486_s5 = sshll.u32 (!%p173_p10), %s619_s15, 3  ;;  %s204_s19 = scalar_lea.vmem (!%p173_p10), [#allocation2], %s432_s4 }
  0x11   : > { %s328_s8 = scalar_lea.hbm (!%p173_p10), %s784_s3, %s486_s5  ;;  %s569_s4 = scalar_lea.hbm (!%p173_p10), %s784_s3, 16 }
  0x12   : > { %s331_s23 = sshll.u32 (!%p173_p10), %s328_s8, 4  ;;  %s332_s23 = int_to_ptr.hbm [resolvable:$true] %s331_s23 }
  0x13   : > { %s563_s26 = sshra.s32 (!%p173_p10), %s332_s23, 4  ;;  %s564_s26 = int_to_ptr.hbm [resolvable:$true] %s563_s26 }
  0x14   : > { %v485_v0 = vld [vmem:[%s782_s1 + $0x38] sm:$0xff]  ;;  %v484_v1 = vld [vmem:[%s782_s1 + $0x30] sm:$0xff]  ;;  %v483_v2 = vld [vmem:[%s782_s1 + $0x28] sm:$0xff]  ;;  %s207_s11 = scalar_select %p206_p11, %s619_s15, 1 }
  0x15   : > { %296 = vmatpush.bf16.msra.mxu0 %v485_v0  ;;  %v482_v3 = vld [vmem:[%s782_s1 + $0x20] sm:$0xff]  ;;  %v481_v4 = vld [vmem:[%s782_s1 + $0x18] sm:$0xff]  ;;  %v480_v5 = vld [vmem:[%s782_s1 + $0x10] sm:$0xff]  ;;  %s315_s15 = scalar_lea.sflag [#allocation3], %s202_s30  ;;  %s565_s27 = scalar_lea.hbm %s564_s26, 8 }
  0x16   : > { %v479_v6 = vld [vmem:[%s782_s1 + $0x8] sm:$0xff]  ;;  %s476_s21 = sshll.u32 %s207_s11, 3  ;;  %v478_v7 = vld [vmem:[%s782_s1] sm:$0xff]  ;;  %p566_p12 = scmp.ne.s32.totalorder %s564_s26, %s565_s27 }
  0x17   : > { %s213_s29 = scalar_lea.vmem %s781_s0, %s476_s21  ;;  %v240_v10 = vld [vmem:[%s783_s2] sm:$0xff]  ;;  %v241_v11 = vld [vmem:[%s783_s2 + $0x8] sm:$0xff]  ;;  %s746_s21 = sshll.u32 %s204_s19, 4  ;;  %s330_s21 = int_to_ptr.vmem [resolvable:$true] %s746_s21 }
  0x18   : > { %v477_v8 = vld [vmem:[%s213_s29] sm:$0xff]  ;;  %p567_p13 = pnand %p566_p12, %p691_p4  ;;  %p570_p1 = scmp.lt.s32.totalorder %s564_s26, %s784_s3 }
  0x19   : > { %297 = vmatpush.bf16.msra.mxu0 %v484_v1  ;;  %p571_p2 = scmp.lt.s32.totalorder %s569_s4, %s565_s27 }
  0x1a   : > { %p568_p0 = pneg %p567_p13 }
  0x1b   : > { %p572_p3 = por %p571_p2, %p570_p1 }
  0x1d   : > { %298 = vmatpush.bf16.msra.mxu0 %v483_v2  ;;  %p573_p5 = pnand %p572_p3, %p568_p0 }
  0x21   : > { %299 = vmatpush.bf16.msra.mxu0 %v482_v3 }
  0x25   : > { %300 = vmatpush.bf16.msra.mxu0 %v481_v4 }
  0x29   : > { %301 = vmatpush.bf16.msra.mxu0 %v480_v5 }
  0x2d   : > { %302 = vmatpush.bf16.msra.mxu0 %v479_v6 }
  0x31   : > { %303 = vmatpush.bf16.msra.mxu0 %v478_v7 }
  0x34   : > { %304 = vmatmul.bf16.vlgmr.msra.gmra.mxu0 %v477_v8 }
  0xb1   : > { %v305_v9 = vpop.f32.mrf.mxu0 }
  0xb2   : > { %v306_v13 = vadd.f32 %v305_v9, %v240_v10 }
  0xb9   : > { %v307_v12 = vpop.f32.mrf.mxu0 }
  0xba   : > { %v308_v14 = vadd.f32 %v307_v12, %v241_v11 }
  0xbc   : > { %v490_v15 = vpack.c.bf16 %v308_v14, %v306_v13 }
  0xbe   : > { %491 = vst [vmem:[%s204_s19] sm:$0xff] %v490_v15  }
  0xbf   : > { %576 = shalt.err (!%p573_p5)
}
  0xc0   : > { %s629_s30 = smov 64   ;;  %s630_s7 = smov 4  }
  0xc1   : > { %492 = dma.vmem_to_hbm [thread:$0]  (%p691_p4), %s330_s21, 128, %s332_s23, %s315_s15, %s629_s30, %s629_s30, %s630_s7  }
  0xc2 PF: > { %p498_p6 = scmp.ge.s32.totalorder %s627_s17, 2  ;;  %s346_s8 = sand.u32 1, %s607_s12  }
  0xc3   : > { %s347_s9 = scalar_lea.sflag [#allocation3], %s346_s8 }
  0xc4   : > { %p495_p7 = pnand %p498_p6, %p698_p8 }
  0xc6   : > { %p496_p9 = pneg %p495_p7 }
  0xc8   : > { %602 = dma.done.wait (%p496_p9), %s347_s9, 128  }
  0xc9   : > { %604 = vsyncadd (%p496_p9), %s347_s9, 4294967168  ;;  %s16_s17 = sadd.s32 1, %s627_s17   ;;  %s787_s12 = smov %s611_s13 }
  0xca   : > { %p13_p10 = scmp.ge.s32.totalorder %s16_s17, 4   ;;  %s788_s13 = smov %s615_s14 }
  0xcb   : > { %s789_s14 = smov %s704_s25  ;;  %s790_s15 = smov %s623_s16 }
  0xcc   : > { %s791_s16 = smov %s793_s20  ;;  %15 = sbr.rel (!%p13_p10) target bundleno = 4 (0x4), region = 70 }
  0xd1   :  { %353 = vsyncpa [#allocation3], 1 }
  0xd2   :  { %355 = vsyncpa [#allocation3 + $0x1], 1 }

</bundles_post_ra>
